<compile_context>
chip_gen: v6e
topology: v6e:2x2x1
jax: 0.10.0
libtpu: 0.0.40
codegen_flags: <defaults>
</compile_context>

<pallas_src>
import functools
import math

import jax
import jax.numpy as jnp
from jax import lax
from jax.experimental import pallas as pl
from jax.experimental.pallas import tpu as pltpu


def _round_up(x, m):
    return ((x + m - 1) // m) * m


# --------------------------------------------------------------------------
# Pallas kernels: one MXU matmul, fused bias (+ residual) (+ ReLU) epilogue.
# BN scale / residual scale are folded into the weights at init time.
# --------------------------------------------------------------------------
def _mm_kernel(a_ref, w_ref, b_ref, o_ref, *, relu):
    acc = jnp.dot(a_ref[...], w_ref[...], preferred_element_type=jnp.float32)
    y = acc + b_ref[...]
    if relu:
        y = jnp.maximum(y, 0.0)
    o_ref[...] = y.astype(o_ref.dtype)


def _mm_res_kernel(a_ref, w_ref, b_ref, r_ref, o_ref, *, relu):
    acc = jnp.dot(a_ref[...], w_ref[...], preferred_element_type=jnp.float32)
    y = r_ref[...].astype(jnp.float32) + acc + b_ref[...]
    if relu:
        y = jnp.maximum(y, 0.0)
    o_ref[...] = y.astype(o_ref.dtype)


_TM_FULL = 1024   # up to this M: single full-extent M block (grid = 1 step)
_TM_TILE = 512    # above it (stem convs only): tile M at 512


def fused_matmul(a, w, bias, relu, residual=None, out_dtype=jnp.bfloat16):
    """y = relu?( [residual +] (a @ w) + bias ).

    a: (M, K) activation (cast to bf16 here).
    w: (Kp, N) bf16, K pre-padded to a 128 multiple, BN/res scales pre-folded.
    bias: (1, N) f32.  residual: optional (M, N), any float dtype.
    """
    M, K = a.shape
    Kp, N = w.shape
    assert Kp >= K and Kp % 128 == 0, (K, Kp)

    a = a.astype(jnp.bfloat16)
    if Kp != K:                                     # few layers: K not 128-aligned
        a = jnp.pad(a, ((0, 0), (0, Kp - K)))

    if M <= _TM_FULL:
        tm, Mp = M, M                               # single block, no padding
    else:
        tm = _TM_TILE
        Mp = _round_up(M, tm)
        a = jnp.pad(a, ((0, Mp - M), (0, 0)))
        if residual is not None:
            residual = jnp.pad(residual, ((0, Mp - M), (0, 0)))

    grid = (Mp // tm,)

    in_specs = [
        pl.BlockSpec((tm, Kp), lambda i: (i, 0)),   # activation tile
        pl.BlockSpec((Kp, N), lambda i: (0, 0)),    # full-N weight (lane dense)
        pl.BlockSpec((1, N), lambda i: (0, 0)),     # bias
    ]
    args = [a, w, bias]
    if residual is None:
        kern = functools.partial(_mm_kernel, relu=relu)
    else:
        kern = functools.partial(_mm_res_kernel, relu=relu)
        in_specs.append(pl.BlockSpec((tm, N), lambda i: (i, 0)))
        args.append(residual)

    out = pl.pallas_call(
        kern,
        out_shape=jax.ShapeDtypeStruct((Mp, N), out_dtype),
        grid_spec=pltpu.PrefetchScalarGridSpec(
            num_scalar_prefetch=0,
            grid=grid,
            in_specs=in_specs,
            out_specs=pl.BlockSpec((tm, N), lambda i: (i, 0)),
        ),
        compiler_params=pltpu.CompilerParams(
            dimension_semantics=("parallel",)),
    )(*args)
    if Mp != M:
        out = out[:M]
    return out


# --------------------------------------------------------------------------
# Convolution = im2col (bf16 glue) + fused Pallas matmul
# --------------------------------------------------------------------------
def _im2col(x, kh, kw, stride, pad):
    n, h, w, c = x.shape
    ph, pw = pad
    xp = jnp.pad(x, ((0, 0), (ph, ph), (pw, pw), (0, 0)))
    oh = (h + 2 * ph - kh) // stride + 1
    ow = (w + 2 * pw - kw) // stride + 1
    cols = []
    for i in range(kh):
        for j in range(kw):
            cols.append(xp[:, i:i + stride * (oh - 1) + 1:stride,
                           j:j + stride * (ow - 1) + 1:stride, :])
    patches = jnp.stack(cols, axis=3)                    # [N, oh, ow, kh*kw, C]
    return patches.reshape(n * oh * ow, kh * kw * c), oh, ow


def conv2d(x, p, kh, kw, stride=1, pad=(0, 0), relu=True, residual=None,
           out_dtype=jnp.bfloat16):
    n, h, w, cin = x.shape
    if kh == 1 and kw == 1 and stride == 1 and pad == (0, 0):
        oh, ow = h, w
        patches = x.reshape(n * h * w, cin)              # free reshape
    else:
        patches, oh, ow = _im2col(x.astype(jnp.bfloat16), kh, kw, stride, pad)
    cout = p['w'].shape[1]
    y = fused_matmul(patches, p['w'], p['b'], relu=relu, residual=residual,
                     out_dtype=out_dtype)
    return y.reshape(n, oh, ow, cout)


# --------------------------------------------------------------------------
# Pooling (left to XLA: pure launch overhead as Pallas kernels at these sizes)
# --------------------------------------------------------------------------
def maxpool2d(x, k=3, stride=2):
    return lax.reduce_window(x, jnp.array(-jnp.inf, x.dtype), lax.max,
                             window_dimensions=(1, k, k, 1),
                             window_strides=(1, stride, stride, 1),
                             padding='VALID')


def global_avgpool(x):
    return jnp.mean(x.astype(jnp.float32), axis=(1, 2))


# --------------------------------------------------------------------------
# Parameter init (deterministic, synthetic) — weights stored in matmul form,
# BN scale / residual scale folded, K pre-padded to 128.
# --------------------------------------------------------------------------
class KeyGen:
    def __init__(self, key):
        self._key = key

    def __call__(self):
        self._key, sub = jax.random.split(self._key)
        return sub


def _norm(key, shape, std):
    return std * jax.random.normal(key, shape, jnp.float32)


def _pack(w4, bias):
    """(kh,kw,cin,cout) folded f32 weight -> {(Kp,N) bf16 weight, (1,N) f32 bias}."""
    kh, kw, cin, cout = w4.shape
    k = kh * kw * cin
    kp = _round_up(k, 128)
    w2 = w4.reshape(k, cout)
    if kp != k:
        w2 = jnp.pad(w2, ((0, kp - k), (0, 0)))
    return {'w': w2.astype(jnp.bfloat16),
            'b': bias.reshape(1, cout).astype(jnp.float32)}


def init_basic(key, cin, cout, kh, kw):
    """Conv(no bias) + BatchNorm(eps=1e-3) + ReLU, folded for inference."""
    ks = jax.random.split(key, 5)
    w = _norm(ks[0], (kh, kw, cin, cout), 1.0 / math.sqrt(kh * kw * cin))
    gamma = 1.0 + 0.05 * jax.random.normal(ks[1], (cout,), jnp.float32)
    beta = 0.05 * jax.random.normal(ks[2], (cout,), jnp.float32)
    mean = 0.05 * jax.random.normal(ks[3], (cout,), jnp.float32)
    var = 1.0 + 0.05 * jnp.abs(jax.random.normal(ks[4], (cout,), jnp.float32))
    scale = gamma * lax.rsqrt(var + 1e-3)
    return _pack(w * scale, beta - mean * scale)         # fold BN scale (f32)


def init_plain(key, cin, cout, kh, kw, res_scale=1.0):
    """Conv with bias, no BN/ReLU (branch-merge conv); residual scale folded."""
    k1, k2 = jax.random.split(key)
    w = _norm(k1, (kh, kw, cin, cout), 1.0 / math.sqrt(kh * kw * cin))
    b = 0.05 * jax.random.normal(k2, (cout,), jnp.float32)
    return _pack(w * res_scale, b * res_scale)


def _merge(ps):
    """Concatenate sibling 1x1 convs (same input) along the output-channel dim."""
    return {'w': jnp.concatenate([q['w'] for q in ps], axis=1),
            'b': jnp.concatenate([q['b'] for q in ps], axis=1)}


def init_block35(kg):
    return {'head': _merge([init_basic(kg(), 256, 32, 1, 1) for _ in range(3)]),
            'b1_1': init_basic(kg(), 32, 32, 3, 3),
            'b2_1': init_basic(kg(), 32, 32, 3, 3),
            'b2_2': init_basic(kg(), 32, 32, 3, 3),
            'conv': init_plain(kg(), 96, 256, 1, 1, res_scale=0.17)}


def init_block17(kg):
    return {'head': _merge([init_basic(kg(), 896, 128, 1, 1) for _ in range(2)]),
            'b1_1': init_basic(kg(), 128, 128, 1, 7),
            'b1_2': init_basic(kg(), 128, 128, 7, 1),
            'conv': init_plain(kg(), 256, 896, 1, 1, res_scale=0.10)}


def init_block8(kg, res_scale):
    return {'head': _merge([init_basic(kg(), 1792, 192, 1, 1) for _ in range(2)]),
            'b1_1': init_basic(kg(), 192, 192, 1, 3),
            'b1_2': init_basic(kg(), 192, 192, 3, 1),
            'conv': init_plain(kg(), 384, 1792, 1, 1, res_scale=res_scale)}


def init_face_classifier(key, num_classes):
    kg = KeyGen(key)
    p = {}
    p['conv2d_1a'] = init_basic(kg(), 3, 32, 3, 3)
    p['conv2d_2a'] = init_basic(kg(), 32, 32, 3, 3)
    p['conv2d_2b'] = init_basic(kg(), 32, 64, 3, 3)
    p['conv2d_3b'] = init_basic(kg(), 64, 80, 1, 1)
    p['conv2d_4a'] = init_basic(kg(), 80, 192, 3, 3)
    p['conv2d_4b'] = init_basic(kg(), 192, 256, 3, 3)
    p['repeat_1'] = [init_block35(kg) for _ in range(5)]
    p['mixed_6a'] = {'b0': init_basic(kg(), 256, 384, 3, 3),
                     'b1_0': init_basic(kg(), 256, 192, 1, 1),
                     'b1_1': init_basic(kg(), 192, 192, 3, 3),
                     'b1_2': init_basic(kg(), 192, 256, 3, 3)}
    p['repeat_2'] = [init_block17(kg) for _ in range(10)]
    p['mixed_7a'] = {'head': _merge([init_basic(kg(), 896, 256, 1, 1)
                                     for _ in range(3)]),
                     'b0_1': init_basic(kg(), 256, 384, 3, 3),
                     'b1_1': init_basic(kg(), 256, 256, 3, 3),
                     'b2_1': init_basic(kg(), 256, 256, 3, 3),
                     'b2_2': init_basic(kg(), 256, 256, 3, 3)}
    p['repeat_3'] = [init_block8(kg, 0.20) for _ in range(5)]
    p['block8'] = init_block8(kg, 1.0)                    # Block8(noReLU=True)
    # last_linear (1792->512, no bias) + last_bn (eps=1e-3), folded.
    ks = jax.random.split(kg(), 5)
    w = _norm(ks[0], (1792, 512), 1.0 / math.sqrt(1792))
    gamma = 1.0 + 0.05 * jax.random.normal(ks[1], (512,), jnp.float32)
    beta = 0.05 * jax.random.normal(ks[2], (512,), jnp.float32)
    mean = 0.05 * jax.random.normal(ks[3], (512,), jnp.float32)
    var = 1.0 + 0.05 * jnp.abs(jax.random.normal(ks[4], (512,), jnp.float32))
    scale = gamma * lax.rsqrt(var + 1e-3)
    p['last_linear'] = {'w': (w * scale).astype(jnp.bfloat16),
                        'b': (beta - mean * scale).reshape(1, 512).astype(jnp.float32)}
    k1, k2 = jax.random.split(kg())
    p['logits'] = {'w': _norm(k1, (512, num_classes),
                              1.0 / math.sqrt(512)).astype(jnp.bfloat16),
                   'b': (0.05 * jax.random.normal(k2, (num_classes,), jnp.float32)
                         ).reshape(1, num_classes)}
    return p


# --------------------------------------------------------------------------
# Inception-ResNet blocks (merged 1x1 heads; residual fused into merge conv;
# residual trunk carried in f32, branch intermediates in bf16)
# --------------------------------------------------------------------------
def block35_apply(x, p):
    n, h, w, c = x.shape                                  # c = 256
    head = conv2d(x, p['head'], 1, 1)                     # (.,96) = b0|b1_0|b2_0
    b1 = conv2d(head[..., 32:64], p['b1_1'], 3, 3, pad=(1, 1))
    b2 = conv2d(head[..., 64:96], p['b2_1'], 3, 3, pad=(1, 1))
    b2 = conv2d(b2, p['b2_2'], 3, 3, pad=(1, 1))
    cat = jnp.concatenate([head[..., 0:32], b1, b2], axis=-1)
    return conv2d(cat, p['conv'], 1, 1, relu=True,
                  residual=x.reshape(n * h * w, c), out_dtype=jnp.float32)


def block17_apply(x, p):
    n, h, w, c = x.shape                                  # c = 896
    head = conv2d(x, p['head'], 1, 1)                     # (.,256) = b0|b1_0
    b1 = conv2d(head[..., 128:256], p['b1_1'], 1, 7, pad=(0, 3))
    b1 = conv2d(b1, p['b1_2'], 7, 1, pad=(3, 0))
    cat = jnp.concatenate([head[..., 0:128], b1], axis=-1)
    return conv2d(cat, p['conv'], 1, 1, relu=True,
                  residual=x.reshape(n * h * w, c), out_dtype=jnp.float32)


def block8_apply(x, p, relu):
    n, h, w, c = x.shape                                  # c = 1792
    head = conv2d(x, p['head'], 1, 1)                     # (.,384) = b0|b1_0
    b1 = conv2d(head[..., 192:384], p['b1_1'], 1, 3, pad=(0, 1))
    b1 = conv2d(b1, p['b1_2'], 3, 1, pad=(1, 0))
    cat = jnp.concatenate([head[..., 0:192], b1], axis=-1)
    return conv2d(cat, p['conv'], 1, 1, relu=relu,
                  residual=x.reshape(n * h * w, c), out_dtype=jnp.float32)


def mixed_6a_apply(x, p):
    b0 = conv2d(x, p['b0'], 3, 3, stride=2, out_dtype=jnp.float32)
    b1 = conv2d(x, p['b1_0'], 1, 1)
    b1 = conv2d(b1, p['b1_1'], 3, 3, pad=(1, 1))
    b1 = conv2d(b1, p['b1_2'], 3, 3, stride=2, out_dtype=jnp.float32)
    b2 = maxpool2d(x, 3, 2)
    return jnp.concatenate([b0, b1, b2], axis=-1)


def mixed_7a_apply(x, p):
    head = conv2d(x, p['head'], 1, 1)                     # (.,768) = b0_0|b1_0|b2_0
    b0 = conv2d(head[..., 0:256], p['b0_1'], 3, 3, stride=2, out_dtype=jnp.float32)
    b1 = conv2d(head[..., 256:512], p['b1_1'], 3, 3, stride=2, out_dtype=jnp.float32)
    b2 = conv2d(head[..., 512:768], p['b2_1'], 3, 3, pad=(1, 1))
    b2 = conv2d(b2, p['b2_2'], 3, 3, stride=2, out_dtype=jnp.float32)
    b3 = maxpool2d(x, 3, 2)
    return jnp.concatenate([b0, b1, b2, b3], axis=-1)


# --------------------------------------------------------------------------
# Full forward (FaceClassifier.forward == InceptionResnetV1(classify=True))
# --------------------------------------------------------------------------
@jax.jit
def face_classifier_forward(params, x_nchw):
    # accepts NCHW (PyTorch convention); internally NHWC, bf16 branch activations
    x = jnp.transpose(x_nchw, (0, 2, 3, 1)).astype(jnp.bfloat16)
    x = conv2d(x, params['conv2d_1a'], 3, 3, stride=2)
    x = conv2d(x, params['conv2d_2a'], 3, 3)
    x = conv2d(x, params['conv2d_2b'], 3, 3, pad=(1, 1))
    x = maxpool2d(x, 3, 2)
    x = conv2d(x, params['conv2d_3b'], 1, 1)
    x = conv2d(x, params['conv2d_4a'], 3, 3)
    x = conv2d(x, params['conv2d_4b'], 3, 3, stride=2, out_dtype=jnp.float32)

    for bp in params['repeat_1']:                         # 5x Block35 (unrolled)
        x = block35_apply(x, bp)
    x = mixed_6a_apply(x, params['mixed_6a'])
    for bp in params['repeat_2']:                         # 10x Block17 (unrolled)
        x = block17_apply(x, bp)
    x = mixed_7a_apply(x, params['mixed_7a'])
    for bp in params['repeat_3']:                         # 5x Block8 (unrolled)
        x = block8_apply(x, bp, relu=True)
    x = block8_apply(x, params['block8'], relu=False)     # Block8(noReLU=True)

    x = global_avgpool(x)                                 # (N, 1792), f32
    # dropout (p=0.6): identity in eval mode
    x = fused_matmul(x, params['last_linear']['w'], params['last_linear']['b'],
                     relu=False, out_dtype=jnp.float32)   # last_linear + last_bn
    x = fused_matmul(x, params['logits']['w'], params['logits']['b'],
                     relu=False, out_dtype=jnp.float32)   # logits (classify=True)
    return x


if __name__ == "__main__":
    # --- quick numerical sanity check of the fused kernel vs plain JAX ---
    ka, kw_, kb, kr = jax.random.split(jax.random.PRNGKey(1), 4)
    a_t = jax.random.normal(ka, (98, 96), jnp.float32)
    w_t = jax.random.normal(kw_, (128, 256), jnp.float32).astype(jnp.bfloat16)
    b_t = jax.random.normal(kb, (1, 256), jnp.float32)
    r_t = jax.random.normal(kr, (98, 256), jnp.float32)
    got = fused_matmul(a_t, w_t, b_t, relu=True, residual=r_t,
                       out_dtype=jnp.float32)
    a_p = jnp.pad(a_t.astype(jnp.bfloat16), ((0, 0), (0, 32)))
    want = jnp.maximum(
        r_t + jnp.dot(a_p, w_t, preferred_element_type=jnp.float32) + b_t, 0.0)
    assert float(jnp.max(jnp.abs(got - want))) < 2e-2

    # --- full forward ---
    key = jax.random.PRNGKey(0)
    kp, kx = jax.random.split(key)
    num_classes = 8
    params = init_face_classifier(kp, num_classes)
    # Smallest spatial size the InceptionResnetV1 stem supports is ~75; use 80.
    x = jax.random.normal(kx, (2, 3, 80, 80), jnp.float32)
    out = face_classifier_forward(params, x)
    out = jax.block_until_ready(out)
    assert out.shape == (2, num_classes), out.shape
    assert bool(jnp.all(jnp.isfinite(out)))
    print("KERNEL_OK")
</pallas_src>

<mosaic_0001>
module attributes {stable_mosaic.version = 11 : i64} {
  func.func @_mm_res_kernel(%arg0: i32, %arg1: memref<98x128xbf16, #tpu.memory_space<vmem>>, %arg2: memref<128x256xbf16, #tpu.memory_space<vmem>>, %arg3: memref<1x256xf32, #tpu.memory_space<vmem>>, %arg4: memref<98x256xf32, #tpu.memory_space<vmem>>, %arg5: memref<98x256xf32, #tpu.memory_space<vmem>>) attributes {dimension_semantics = [#tpu.dimension_semantics<parallel>], iteration_bounds = array<i64: 1>, scalar_prefetch = 0 : i64, scratch_operands = 0 : i64, tpu.core_type = #tpu.core_type<tc>, window_params = [{transform_indices = @transform_0, window_bounds = array<i64: 98, 128>}, {pipeline_mode = #tpu.pipeline_mode<synchronous>, transform_indices = @transform_1, window_bounds = array<i64: 128, 256>}, {pipeline_mode = #tpu.pipeline_mode<synchronous>, transform_indices = @transform_2, window_bounds = array<i64: 1, 256>}, {transform_indices = @transform_3, window_bounds = array<i64: 98, 256>}, {transform_indices = @transform_4, window_bounds = array<i64: 98, 256>}]} {
    %c0 = arith.constant 0 : index
    %c0_0 = arith.constant 0 : index
    %0 = vector.load %arg1[%c0, %c0_0] : memref<98x128xbf16, #tpu.memory_space<vmem>>, vector<98x128xbf16>
    %c0_1 = arith.constant 0 : index
    %c0_2 = arith.constant 0 : index
    %1 = vector.load %arg2[%c0_1, %c0_2] : memref<128x256xbf16, #tpu.memory_space<vmem>>, vector<128x256xbf16>
    %cst = arith.constant dense<0.000000e+00> : vector<98x256xf32>
    %2 = tpu.matmul %0, %1, %cst {dimension_numbers = #tpu.dot_dimension_numbers<[1], [0], [0], [1], [0, 0, 1, 1], [], []>} : vector<98x128xbf16>, vector<128x256xbf16>, vector<98x256xf32> -> vector<98x256xf32>
    %c0_3 = arith.constant 0 : index
    %c0_4 = arith.constant 0 : index
    %3 = vector.load %arg4[%c0_3, %c0_4] : memref<98x256xf32, #tpu.memory_space<vmem>>, vector<98x256xf32>
    %4 = arith.addf %3, %2 : vector<98x256xf32>
    %c0_5 = arith.constant 0 : index
    %c0_6 = arith.constant 0 : index
    %5 = vector.load %arg3[%c0_5, %c0_6] : memref<1x256xf32, #tpu.memory_space<vmem>>, vector<1x256xf32>
    %6 = vector.broadcast %5 : vector<1x256xf32> to vector<98x256xf32>
    %7 = arith.addf %4, %6 : vector<98x256xf32>
    %cst_7 = arith.constant 0.000000e+00 : f32
    %8 = vector.broadcast %cst_7 : f32 to vector<98x256xf32>
    %9 = arith.maximumf %7, %8 : vector<98x256xf32>
    %c0_8 = arith.constant 0 : index
    %c0_9 = arith.constant 0 : index
    %10 = vector.load %arg5[%c0_8, %c0_9] : memref<98x256xf32, #tpu.memory_space<vmem>>, vector<98x256xf32>
    tpu.vector_store %arg5[%c0_8, %c0_9], %9 {strides = array<i32>} : memref<98x256xf32, #tpu.memory_space<vmem>>, vector<98x256xf32>,
    return
  }
  func.func @transform_0(%arg0: i32) -> (i32, i32) {
    %c0_i32 = arith.constant 0 : i32
    %c0_i32_0 = arith.constant 0 : i32
    return %arg0, %c0_i32 : i32, i32
  }
  func.func @transform_1(%arg0: i32) -> (i32, i32) {
    %c0_i32 = arith.constant 0 : i32
    %c0_i32_0 = arith.constant 0 : i32
    %c0_i32_1 = arith.constant 0 : i32
    return %c0_i32, %c0_i32_0 : i32, i32
  }
  func.func @transform_2(%arg0: i32) -> (i32, i32) {
    %c0_i32 = arith.constant 0 : i32
    %c0_i32_0 = arith.constant 0 : i32
    %c0_i32_1 = arith.constant 0 : i32
    return %c0_i32, %c0_i32_0 : i32, i32
  }
  func.func @transform_3(%arg0: i32) -> (i32, i32) {
    %c0_i32 = arith.constant 0 : i32
    %c0_i32_0 = arith.constant 0 : i32
    return %arg0, %c0_i32 : i32, i32
  }
  func.func @transform_4(%arg0: i32) -> (i32, i32) {
    %c0_i32 = arith.constant 0 : i32
    %c0_i32_0 = arith.constant 0 : i32
    return %arg0, %c0_i32 : i32, i32
  }
}

</mosaic_0001>

<bundles_post_ra>
// kernel: tpu_custom_call.1
= control target key start
LH: loop header
LB: loop body
LE: loop exit
PB: predicated region body
PF: predicated region fallthrough
CT: control target
= control target key end

     0   :  { %9 = vsyncpa [#allocation3], 0  ;;  %s731_s0 = inlined_call_operand.hbm [shape: bf16[98,128], index: 0, kind: input, shape index: {}]   ;;  %s732_s1 = inlined_call_operand.hbm [shape: bf16[128,256], index: 1, kind: input, shape index: {}]   ;;  %s733_s2 = inlined_call_operand.vmem [shape: f32[1,256], index: 2, kind: input, shape index: {}]   ;;  %s734_s3 = inlined_call_operand.hbm [shape: f32[98,256], index: 3, kind: input, shape index: {}]   ;;  %s735_s4 = inlined_call_operand.hbm [shape: f32[98,256], index: 4, kind: output, shape index: {}]  }
   0x1   :  { %10 = vsyncpa [#allocation6], 0 }
   0x2   :  { %11 = vsyncpa [#allocation4], 0  ;;  %s637_s15 = smov [#allocation5]  }
   0x3   :  { %s29_s16 = sshll.u32 %s637_s15, 4  ;;  %s30_s16 = int_to_ptr.vmem [resolvable:$true] %s29_s16 }
   0x4   :  { %s559_s17 = scalar_lea.vmem %s30_s16, 2048  ;;  %p564_p1 = scmp.lt.s32.totalorder %s30_s16, %s30_s16 }
   0x5   :  { %p560_p0 = scmp.ne.s32.totalorder %s30_s16, %s559_s17  ;;  %p565_p2 = scmp.lt.s32.totalorder %s559_s17, %s559_s17 }
   0x7   :  { %p566_p3 = por %p565_p2, %p564_p1 }
   0x9   :  { %p567_p4 = pnand %p566_p3, %p560_p0 }
   0xb   :  { %570 = shalt.err (!%p567_p4)
}
   0xc   :  { %s638_s18 = smov 128   ;;  %s639_s19 = smov 8  }
   0xd   :  { %35 = dma.hbm_to_vmem [thread:$0]  %s732_s1, 2048, %s30_s16, [#allocation6], %s638_s18, %s638_s18, %s639_s19  }
   0xe   :  { %s640_s22 = smov [#allocation2]  }
   0xf   :  { %s17_s23 = sshll.u32 %s640_s22, 4  ;;  %s18_s23 = int_to_ptr.vmem [resolvable:$true] %s17_s23 }
  0x10   :  { %s579_s24 = scalar_lea.vmem %s18_s23, 832  ;;  %p584_p6 = scmp.lt.s32.totalorder %s18_s23, %s18_s23 }
  0x11   :  { %p580_p5 = scmp.ne.s32.totalorder %s18_s23, %s579_s24  ;;  %p585_p7 = scmp.lt.s32.totalorder %s579_s24, %s579_s24 }
  0x13   :  { %p586_p8 = por %p585_p7, %p584_p6 }
  0x15   :  { %p587_p9 = pnand %p586_p8, %p580_p5 }
  0x17   :  { %590 = shalt.err (!%p587_p9)
}
  0x18   :  { %s641_s25 = smov 64   ;;  %s642_s26 = smov 4  }
  0x19   :  { %23 = dma.hbm_to_vmem [thread:$0]  %s731_s0, 832, %s18_s23, [#allocation3], %s641_s25, %s641_s25, %s642_s26  }
  0x1a   :  { %s643_s29 = smov [#allocation7]  }
  0x1b   :  { %s43_s30 = sshll.u32 %s643_s29, 4  ;;  %s44_s30 = int_to_ptr.vmem [resolvable:$true] %s43_s30 }
  0x1c   :  { %s599_s1 = scalar_lea.vmem %s44_s30, 3328  ;;  %p604_p11 = scmp.lt.s32.totalorder %s44_s30, %s44_s30 }
  0x1d   :  { %p600_p10 = scmp.ne.s32.totalorder %s44_s30, %s599_s1  ;;  %p605_p12 = scmp.lt.s32.totalorder %s599_s1, %s599_s1 }
  0x1f   :  { %p606_p13 = por %p605_p12, %p604_p11 }
  0x21   :  { %p607_p0 = pnand %p606_p13, %p600_p10 }
  0x23   :  { %610 = shalt.err (!%p607_p0)
}
  0x24   :  { %s644_s5 = smov 256   ;;  %s645_s6 = smov 16  }
  0x25   :  { %49 = dma.hbm_to_vmem [thread:$0]  %s734_s3, 3328, %s44_s30, [#allocation6], %s644_s5, %s644_s5, %s645_s6  }
  0x26   :  { %631 = dma.done.wait [#allocation3], 832  }
  0x27   :  { %632 = vsyncadd [#allocation3], 4294966464 }
  0x28   :  { %633 = dma.done.wait [#allocation6], 5376  }
  0x29   :  { %634 = vsyncadd [#allocation6], 4294961920  ;;  %v646_v0 = vmov 0   ;;  %v520_v1 = vld [vmem:[#allocation5 + $0x74] ss:$8 sps:$4 sm:$0xff]   ;;  %v544_v17 = vld [vmem:[#allocation2] sm:$0xff]   ;;  %v364_v24 = vlaneseq }
  0x2a   :  { %241 = vmatprep.mubr.bf16.mxu0 %v646_v0  ;;  %281 = vmatprep.mubr.bf16.mxu1 %v646_v0  ;;  %v522_v2 = vld [vmem:[#allocation5 + $0x70] ss:$8 sps:$4 sm:$0xff]   ;;  %v523_v3 = vld [vmem:[#allocation5 + $0x64] ss:$8 sps:$4 sm:$0xff]   ;;  %v525_v4 = vld [vmem:[#allocation5 + $0x60] ss:$8 sps:$4 sm:$0xff]  }
  0x2b   :  { %209 = vmatprep.subr.bf16.mxu0 %v520_v1  ;;  %493 = vmatprep.subr.bf16.mxu1 %v520_v1  ;;  %v526_v5 = vld [vmem:[#allocation5 + $0x54] ss:$8 sps:$4 sm:$0xff]   ;;  %v528_v6 = vld [vmem:[#allocation5 + $0x50] ss:$8 sps:$4 sm:$0xff]   ;;  %v529_v7 = vld [vmem:[#allocation5 + $0x44] ss:$8 sps:$4 sm:$0xff]  }
  0x2c   :  { %210 = vmatpush1.bf16.msra.mxu0 %v522_v2  ;;  %501 = vmatpush1.bf16.msra.mxu1 %v522_v2  ;;  %v531_v8 = vld [vmem:[#allocation5 + $0x40] ss:$8 sps:$4 sm:$0xff]   ;;  %v532_v9 = vld [vmem:[#allocation5 + $0x34] ss:$8 sps:$4 sm:$0xff]   ;;  %v534_v10 = vld [vmem:[#allocation5 + $0x30] ss:$8 sps:$4 sm:$0xff]  }
  0x2d   :  { %211 = vmatprep.subr.bf16.mxu0 %v523_v3  ;;  %494 = vmatprep.subr.bf16.mxu1 %v523_v3  ;;  %v535_v11 = vld [vmem:[#allocation5 + $0x24] ss:$8 sps:$4 sm:$0xff]   ;;  %v537_v12 = vld [vmem:[#allocation5 + $0x20] ss:$8 sps:$4 sm:$0xff]   ;;  %v538_v13 = vld [vmem:[#allocation5 + $0x14] ss:$8 sps:$4 sm:$0xff]  }
  0x2e   :  { %v540_v14 = vld [vmem:[#allocation5 + $0x10] ss:$8 sps:$4 sm:$0xff]   ;;  %v541_v15 = vld [vmem:[#allocation5 + $0x4] ss:$8 sps:$4 sm:$0xff]   ;;  %v543_v16 = vld [vmem:[#allocation5] ss:$8 sps:$4 sm:$0xff]  }
  0x2f   :  { %v545_v18 = vld [vmem:[#allocation2 + $0x20] sm:$0xff]   ;;  %v546_v19 = vld [vmem:[#allocation2 + $0x8] sm:$0xff]   ;;  %v548_v21 = vld [vmem:[#allocation2 + $0x10] sm:$0xff]   ;;  %v365_v25 = vshrl.u32 %v364_v24, 7 }
  0x30   :  { %212 = vmatpush1.bf16.msra.mxu0 %v525_v4  ;;  %502 = vmatpush1.bf16.msra.mxu1 %v525_v4  ;;  %v547_v20 = vld [vmem:[#allocation2 + $0x28] sm:$0xff]   ;;  %v549_v22 = vld [vmem:[#allocation2 + $0x30] ss:$0 sps:$4 sm:$0x11]   ;;  %v550_v23 = vld [vmem:[#allocation2 + $0x18] sm:$0xff]  }
  0x31   :  { %213 = vmatprep.subr.bf16.mxu0 %v526_v5  ;;  %495 = vmatprep.subr.bf16.mxu1 %v526_v5  ;;  %v366_v26 = vsub.s32 0, %v365_v25  ;;  %v362_v27 = vld [vmem:[%s733_s2] sm:$0x3]  ;;  %v370_v28 = vsub.s32 1, %v365_v25  ;;  %v310_v29 = vld [vmem:[#allocation7] sm:$0xff]  ;;  %v312_v40 = vld [vmem:[#allocation7 + $0x10] sm:$0xff] }
  0x32   :  { %v326_v30 = vld [vmem:[#allocation7 + $0x80] sm:$0xff]  ;;  %v311_v33 = vld [vmem:[#allocation7 + $0x8] sm:$0xff]  ;;  %v328_v46 = vld [vmem:[#allocation7 + $0x90] sm:$0xff]  ;;  %s647_s2 = smov [#allocation8]  }
  0x33   :  { %v695_v31 = vrot.slane %v362_v27, %v366_v26  ;;  %v327_v35 = vld [vmem:[#allocation7 + $0x88] sm:$0xff]  ;;  %v697_v37 = vrot.slane %v362_v27, %v370_v28  ;;  %v313_v48 = vld [vmem:[#allocation7 + $0x18] sm:$0xff]  ;;  %v314_v56 = vld [vmem:[#allocation7 + $0x20] sm:$0xff]  ;;  %s457_s9 = sshll.u32 %s647_s2, 4  ;;  %s458_s9 = int_to_ptr.vmem [resolvable:$true] %s457_s9 }
  0x34   :  { %214 = vmatpush1.bf16.msra.mxu0 %v528_v6  ;;  %503 = vmatpush1.bf16.msra.mxu1 %v528_v6  ;;  %v329_v50 = vld [vmem:[#allocation7 + $0x98] sm:$0xff]  ;;  %v315_v3 = vld [vmem:[#allocation7 + $0x28] sm:$0xff]  ;;  %s611_s10 = scalar_lea.vmem %s458_s9, 3328  ;;  %p616_p2 = scmp.lt.s32.totalorder %s458_s9, %s458_s9 }
  0x35   :  { %215 = vmatprep.subr.bf16.mxu0 %v529_v7  ;;  %496 = vmatprep.subr.bf16.mxu1 %v529_v7  ;;  %p612_p1 = scmp.ne.s32.totalorder %s458_s9, %s611_s10  ;;  %p617_p3 = scmp.lt.s32.totalorder %s611_s10, %s611_s10 }
  0x37   :  { %p618_p4 = por %p617_p3, %p616_p2 }
  0x38   :  { %216 = vmatpush1.bf16.msra.mxu0 %v531_v8  ;;  %504 = vmatpush1.bf16.msra.mxu1 %v531_v8 }
  0x39   :  { %217 = vmatprep.subr.bf16.mxu0 %v532_v9  ;;  %497 = vmatprep.subr.bf16.mxu1 %v532_v9  ;;  %p619_p5 = pnand %p618_p4, %p612_p1 }
  0x3c   :  { %218 = vmatpush1.bf16.msra.mxu0 %v534_v10  ;;  %505 = vmatpush1.bf16.msra.mxu1 %v534_v10  ;;  %v331_v10 = vld [vmem:[#allocation7 + $0xa8] sm:$0xff] }
  0x3d   :  { %219 = vmatprep.subr.bf16.mxu0 %v535_v11  ;;  %498 = vmatprep.subr.bf16.mxu1 %v535_v11 }
  0x40   :  { %220 = vmatpush1.bf16.msra.mxu0 %v537_v12  ;;  %506 = vmatpush1.bf16.msra.mxu1 %v537_v12 }
  0x41   :  { %221 = vmatprep.subr.bf16.mxu0 %v538_v13  ;;  %499 = vmatprep.subr.bf16.mxu1 %v538_v13  ;;  %v316_v13 = vld [vmem:[#allocation7 + $0x30] sm:$0xff] }
  0x44   :  { %222 = vmatpush1.bf16.msra.mxu0 %v540_v14  ;;  %507 = vmatpush1.bf16.msra.mxu1 %v540_v14 }
  0x45   :  { %223 = vmatprep.subr.bf16.mxu0 %v541_v15  ;;  %500 = vmatprep.subr.bf16.mxu1 %v541_v15 }
  0x48   :  { %224 = vmatpush1.bf16.msra.mxu0 %v543_v16  ;;  %508 = vmatpush1.bf16.msra.mxu1 %v543_v16  ;;  %v332_v16 = vld [vmem:[#allocation7 + $0xb0] sm:$0xff] }
  0x4b   :  { %242 = vmatmul.mubr.bf16.vlgmr.msra.gmra.mxu0 %v544_v17  ;;  %282 = vmatmul.mubr.bf16.vlgmr.msra.gmra.mxu1 %v545_v18 }
  0x4c   :  { %251 = vmatprep.mubr.bf16.mxu0 %v646_v0  ;;  %291 = vmatprep.mubr.bf16.mxu1 %v646_v0 }
  0x53   :  { %252 = vmatmul.mubr.bf16.gmra.mxu0 %v546_v19  ;;  %292 = vmatmul.mubr.bf16.gmra.mxu1 %v547_v20 }
  0x54   :  { %261 = vmatprep.mubr.bf16.mxu0 %v646_v0  ;;  %301 = vmatprep.mubr.bf16.mxu1 %v646_v0 }
  0x5b   :  { %262 = vmatmul.mubr.bf16.gmra.mxu0 %v548_v21  ;;  %302 = vmatmul.mubr.bf16.gmra.mxu1 %v549_v22  ;;  %v317_v22 = vld [vmem:[#allocation7 + $0x38] sm:$0xff] }
  0x5c   :  { %271 = vmatprep.mubr.bf16.mxu0 %v646_v0  ;;  %v330_v0 = vld [vmem:[#allocation7 + $0xa0] sm:$0xff] }
  0x63   :  { %272 = vmatmul.mubr.bf16.gmra.mxu0 %v550_v23 }
 0x10b   :  { %v243_v32 = vpop.f32.mrf.mxu0  ;;  %v283_v34 = vpop.f32.mrf.mxu1 }
 0x10c   :  { %v336_v36 = vadd.f32 %v310_v29, %v243_v32  ;;  %v352_v38 = vadd.f32 %v326_v30, %v283_v34  ;;  %v333_v30 = vld [vmem:[#allocation7 + $0xb8] sm:$0xff]  ;;  %v318_v34 = vld [vmem:[#allocation7 + $0x40] sm:$0xff] }
 0x10d   :  { %v245_v39 = vpop.f32.mrf.mxu0  ;;  %v285_v41 = vpop.f32.mrf.mxu1 }
 0x10e   :  { %v374_v42 = vadd.f32 %v695_v31, %v336_v36  ;;  %v337_v43 = vadd.f32 %v311_v33, %v245_v39  ;;  %v390_v44 = vadd.f32 %v695_v31, %v352_v38  ;;  %v353_v45 = vadd.f32 %v327_v35, %v285_v41 }
 0x10f   :  { %v247_v47 = vpop.f32.mrf.mxu0  ;;  %v287_v49 = vpop.f32.mrf.mxu1 }
 0x110   :  { %v400_v51 = vmax.f32 %v374_v42, 0.0  ;;  %v375_v52 = vadd.f32 %v697_v37, %v337_v43  ;;  %v338_v53 = vadd.f32 %v312_v40, %v247_v47  ;;  %v416_v54 = vmax.f32 %v390_v44, 0.0  ;;  %v334_v42 = vld [vmem:[#allocation7 + $0xc0] sm:$0x3] }
 0x111   :  { %v249_v55 = vpop.f32.mrf.mxu0  ;;  %v391_v57 = vadd.f32 %v697_v37, %v353_v45  ;;  %v354_v58 = vadd.f32 %v328_v46, %v287_v49  ;;  %v289_v59 = vpop.f32.mrf.mxu1  ;;  %v319_v45 = vld [vmem:[#allocation7 + $0x48] sm:$0xff] }
 0x112   :  { %426 = vst [vmem:[#allocation8] sm:$0xff] %v400_v51  ;;  %v401_v60 = vmax.f32 %v375_v52, 0.0  ;;  %v376_v61 = vadd.f32 %v695_v31, %v338_v53  ;;  %v339_v62 = vadd.f32 %v313_v48, %v249_v55  ;;  %442 = vst [vmem:[#allocation8 + $0x80] sm:$0xff] %v416_v54  ;;  %v355_v63 = vadd.f32 %v329_v50, %v289_v59  ;;  %v335_v48 = vld [vmem:[#allocation7 + $0xc8] sm:$0x3]  ;;  %v320_v54 = vld [vmem:[#allocation7 + $0x50] sm:$0xff] }
 0x113   :  { %v253_v1 = vpop.f32.mrf.mxu0  ;;  %v417_v2 = vmax.f32 %v391_v57, 0.0  ;;  %v392_v4 = vadd.f32 %v695_v31, %v354_v58  ;;  %v293_v5 = vpop.f32.mrf.mxu1 }
 0x114   :  { %427 = vst [vmem:[#allocation8 + $0x8] sm:$0xff] %v401_v60  ;;  %v402_v6 = vmax.f32 %v376_v61, 0.0  ;;  %v377_v7 = vadd.f32 %v697_v37, %v339_v62  ;;  %v340_v8 = vadd.f32 %v314_v56, %v253_v1  ;;  %v393_v9 = vadd.f32 %v697_v37, %v355_v63 }
 0x115   :  { %443 = vst [vmem:[#allocation8 + $0x88] sm:$0xff] %v417_v2  ;;  %v255_v11 = vpop.f32.mrf.mxu0  ;;  %v418_v12 = vmax.f32 %v392_v4, 0.0  ;;  %v356_v14 = vadd.f32 %v330_v0, %v293_v5  ;;  %v295_v15 = vpop.f32.mrf.mxu1  ;;  %v321_v0 = vld [vmem:[#allocation7 + $0x58] sm:$0xff] }
 0x116   :  { %428 = vst [vmem:[#allocation8 + $0x10] sm:$0xff] %v402_v6  ;;  %v403_v17 = vmax.f32 %v377_v7, 0.0  ;;  %v378_v18 = vadd.f32 %v695_v31, %v340_v8  ;;  %v341_v19 = vadd.f32 %v315_v3, %v255_v11  ;;  %v419_v20 = vmax.f32 %v393_v9, 0.0  ;;  %v322_v9 = vld [vmem:[#allocation7 + $0x60] sm:$0xff] }
 0x117   :  { %444 = vst [vmem:[#allocation8 + $0x90] sm:$0xff] %v418_v12  ;;  %v257_v21 = vpop.f32.mrf.mxu0  ;;  %v394_v23 = vadd.f32 %v695_v31, %v356_v14  ;;  %v357_v24 = vadd.f32 %v331_v10, %v295_v15  ;;  %v297_v25 = vpop.f32.mrf.mxu1 }
 0x118   :  { %429 = vst [vmem:[#allocation8 + $0x18] sm:$0xff] %v403_v17  ;;  %v404_v26 = vmax.f32 %v378_v18, 0.0  ;;  %v379_v27 = vadd.f32 %v697_v37, %v341_v19  ;;  %v342_v28 = vadd.f32 %v316_v13, %v257_v21  ;;  %445 = vst [vmem:[#allocation8 + $0x98] sm:$0xff] %v419_v20  ;;  %v358_v29 = vadd.f32 %v332_v16, %v297_v25  ;;  %v323_v16 = vld [vmem:[#allocation7 + $0x68] sm:$0xff]  ;;  %v324_v21 = vld [vmem:[#allocation7 + $0x70] sm:$0xff] }
 0x119   :  { %v259_v32 = vpop.f32.mrf.mxu0  ;;  %v420_v33 = vmax.f32 %v394_v23, 0.0  ;;  %v395_v35 = vadd.f32 %v697_v37, %v357_v24  ;;  %v299_v36 = vpop.f32.mrf.mxu1 }
 0x11a   :  { %430 = vst [vmem:[#allocation8 + $0x20] sm:$0xff] %v404_v26  ;;  %v405_v38 = vmax.f32 %v379_v27, 0.0  ;;  %v380_v39 = vadd.f32 %v695_v31, %v342_v28  ;;  %v343_v40 = vadd.f32 %v317_v22, %v259_v32  ;;  %v396_v41 = vadd.f32 %v695_v31, %v358_v29  ;;  %v325_v26 = vld [vmem:[#allocation7 + $0x78] sm:$0xff] }
 0x11b   :  { %446 = vst [vmem:[#allocation8 + $0xa0] sm:$0xff] %v420_v33  ;;  %v263_v43 = vpop.f32.mrf.mxu0  ;;  %v421_v44 = vmax.f32 %v395_v35, 0.0  ;;  %v359_v46 = vadd.f32 %v333_v30, %v299_v36  ;;  %v303_v47 = vpop.f32.mrf.mxu1 }
 0x11c   :  { %431 = vst [vmem:[#allocation8 + $0x28] sm:$0xff] %v405_v38  ;;  %v406_v49 = vmax.f32 %v380_v39, 0.0  ;;  %v381_v50 = vadd.f32 %v697_v37, %v343_v40  ;;  %v344_v51 = vadd.f32 %v318_v34, %v263_v43  ;;  %v422_v52 = vmax.f32 %v396_v41, 0.0 }
 0x11d   :  { %447 = vst [vmem:[#allocation8 + $0xa8] sm:$0xff] %v421_v44  ;;  %v265_v53 = vpop.f32.mrf.mxu0  ;;  %v397_v55 = vadd.f32 %v697_v37, %v359_v46  ;;  %v360_v56 = vadd.f32 %v334_v42, %v303_v47  ;;  %v305_v57 = vpop.f32.mrf.mxu1 }
 0x11e   :  { %432 = vst [vmem:[#allocation8 + $0x30] sm:$0xff] %v406_v49  ;;  %v407_v58 = vmax.f32 %v381_v50, 0.0  ;;  %v382_v59 = vadd.f32 %v695_v31, %v344_v51  ;;  %v345_v60 = vadd.f32 %v319_v45, %v265_v53  ;;  %448 = vst [vmem:[#allocation8 + $0xb0] sm:$0xff] %v422_v52  ;;  %v361_v61 = vadd.f32 %v335_v48, %v305_v57 }
 0x11f   :  { %v267_v62 = vpop.f32.mrf.mxu0  ;;  %v423_v63 = vmax.f32 %v397_v55, 0.0  ;;  %v398_v1 = vadd.f32 %v695_v31, %v360_v56  ;;  %v307_v2 = vpop.f32.mrf.mxu1 }
 0x120   :  { %433 = vst [vmem:[#allocation8 + $0x38] sm:$0xff] %v407_v58  ;;  %v408_v3 = vmax.f32 %v382_v59, 0.0  ;;  %v383_v4 = vadd.f32 %v697_v37, %v345_v60  ;;  %v346_v5 = vadd.f32 %v320_v54, %v267_v62  ;;  %v399_v6 = vadd.f32 %v697_v37, %v361_v61 }
 0x121   :  { %449 = vst [vmem:[#allocation8 + $0xb8] sm:$0xff] %v423_v63  ;;  %v269_v7 = vpop.f32.mrf.mxu0  ;;  %v424_v8 = vmax.f32 %v398_v1, 0.0  ;;  %v308_v10 = vpop.f32.mrf.mxu1 }
 0x122   :  { %434 = vst [vmem:[#allocation8 + $0x40] sm:$0xff] %v408_v3  ;;  %v409_v11 = vmax.f32 %v383_v4, 0.0  ;;  %v384_v12 = vadd.f32 %v695_v31, %v346_v5  ;;  %v347_v13 = vadd.f32 %v321_v0, %v269_v7  ;;  %v425_v14 = vmax.f32 %v399_v6, 0.0 }
 0x123   :  { %450 = vst [vmem:[#allocation8 + $0xc0] sm:$0x3] %v424_v8  ;;  %v273_v15 = vpop.f32.mrf.mxu0 }
 0x124   :  { %435 = vst [vmem:[#allocation8 + $0x48] sm:$0xff] %v409_v11  ;;  %v410_v17 = vmax.f32 %v384_v12, 0.0  ;;  %v385_v18 = vadd.f32 %v697_v37, %v347_v13  ;;  %v348_v19 = vadd.f32 %v322_v9, %v273_v15  ;;  %451 = vst [vmem:[#allocation8 + $0xc8] sm:$0x3] %v425_v14 }
 0x125   :  { %v275_v20 = vpop.f32.mrf.mxu0 }
 0x126   :  { %436 = vst [vmem:[#allocation8 + $0x50] sm:$0xff] %v410_v17  ;;  %v411_v22 = vmax.f32 %v385_v18, 0.0  ;;  %v386_v23 = vadd.f32 %v695_v31, %v348_v19  ;;  %v349_v24 = vadd.f32 %v323_v16, %v275_v20 }
 0x127   :  { %v277_v25 = vpop.f32.mrf.mxu0 }
 0x128   :  { %437 = vst [vmem:[#allocation8 + $0x58] sm:$0xff] %v411_v22  ;;  %v412_v27 = vmax.f32 %v386_v23, 0.0  ;;  %v387_v28 = vadd.f32 %v697_v37, %v349_v24  ;;  %v350_v29 = vadd.f32 %v324_v21, %v277_v25 }
 0x129   :  { %v279_v30 = vpop.f32.mrf.mxu0 }
 0x12a   :  { %438 = vst [vmem:[#allocation8 + $0x60] sm:$0xff] %v412_v27  ;;  %v413_v32 = vmax.f32 %v387_v28, 0.0  ;;  %v388_v33 = vadd.f32 %v695_v31, %v350_v29  ;;  %v351_v34 = vadd.f32 %v325_v26, %v279_v30 }
 0x12c   :  { %439 = vst [vmem:[#allocation8 + $0x68] sm:$0xff] %v413_v32  ;;  %v414_v35 = vmax.f32 %v388_v33, 0.0  ;;  %v389_v36 = vadd.f32 %v697_v37, %v351_v34 }
 0x12e   :  { %440 = vst [vmem:[#allocation8 + $0x70] sm:$0xff] %v414_v35  ;;  %v415_v38 = vmax.f32 %v389_v36, 0.0 }
 0x130   :  { %441 = vst [vmem:[#allocation8 + $0x78] sm:$0xff] %v415_v38 }
 0x131   :  { %622 = shalt.err (!%p619_p5)
}
 0x132   :  { %463 = dma.vmem_to_hbm [thread:$0]  %s458_s9, 3328, %s735_s4, [#allocation4], %s644_s5, %s644_s5, %s645_s6  }
 0x133   :  { %635 = dma.done.wait [#allocation4], 3328  }
 0x134   :  { %636 = vsyncadd [#allocation4], 4294963968 }
 0x135   :  { %467 = vsyncpa [#allocation3], 1 }
 0x136   :  { %468 = vsyncpa [#allocation6], 1 }
 0x137   :  { %469 = vsyncpa [#allocation4], 1 }

</bundles_post_ra>
